<compile_context>
chip_gen: v6e
topology: v6e:2x2x1
jax: 0.10.0
libtpu: 0.0.40
codegen_flags: <defaults>
</compile_context>

<pallas_src>
import math

import jax
import jax.numpy as jnp
from jax.experimental import pallas as pl
from jax.experimental.pallas import tpu as pltpu


def build_position_encoding(input_dim: int, max_seq_len: int = 4 * 24) -> jnp.ndarray:
    """Replicates PositionalEncoding.__init__ buffer exactly (float32)."""
    assert input_dim % 2 == 0, "input_dim must be even (same constraint as the PyTorch original)"
    position = jnp.arange(0, max_seq_len, dtype=jnp.float32)[:, None]          # [L, 1]
    div_term = jnp.exp(
        jnp.arange(0, input_dim, 2, dtype=jnp.float32)
        * -(math.log(10000.0) / input_dim)
    )                                                                           # [D/2]
    pe = jnp.zeros((max_seq_len, input_dim), dtype=jnp.float32)
    pe = pe.at[:, 0::2].set(jnp.sin(position * div_term))
    pe = pe.at[:, 1::2].set(jnp.cos(position * div_term))
    return pe


def _pe_add_kernel(x_ref, pe_ref, o_ref):
    # x_ref: (TB, TL) tile; pe_ref: (1, TL), broadcast over the row (sublane)
    # axis; result stored in the (possibly wider) output dtype.
    o_ref[...] = (x_ref[...] + pe_ref[...]).astype(o_ref.dtype)


def _round_down(x: int, m: int) -> int:
    return (x // m) * m


def _choose_tiles(b: int, sd_pad: int, x_itemsize: int, target_block_bytes: int):
    """Pick (row_tile, lane_tile) for an x block of roughly target_block_bytes."""
    row_bytes = sd_pad * x_itemsize

    def lane_tile(tb):
        tl = _round_down(max(target_block_bytes // max(tb * x_itemsize, 1), 128), 128)
        return max(128, min(tl, sd_pad))

    if b >= 8:
        rows_fit = target_block_bytes // max(row_bytes, 1)
        if rows_fit >= 8:
            # Full-row blocks; tile over batch rows only (PE stays resident).
            tb = min(_round_down(rows_fit, 8), _round_down(b, 8))
            if b >= 16:
                # v7x has 2 TensorCores: keep >= 2 steps on the parallel row
                # axis whenever the batch allows it so both cores stream.
                tb = min(tb, max(8, _round_down(pl.cdiv(b, 2), 8)))
            tb = max(tb, 8)
            tl = sd_pad
        else:
            # A single 8-row block would exceed the budget -> tile the lane axis.
            tb = 8
            tl = lane_tile(tb)
    else:
        # Tiny batch: take all rows (block dim == full array dim is legal) and
        # tile the lane axis if needed to bound the block size.
        tb = b
        tl = sd_pad if tb * row_bytes <= target_block_bytes else lane_tile(tb)
    return tb, tl


def positional_encoding_forward(
    x: jnp.ndarray, pe_table: jnp.ndarray, *, donate_input: bool = False
) -> jnp.ndarray:
    """x: [B, S, D]; pe_table: [max_seq_len, D]. Returns x + pe_table[:S] (broadcast over B)."""
    b, s, d = x.shape
    max_len, pe_d = pe_table.shape
    assert s <= max_len, f"seq_len {s} exceeds max_seq_len {max_len}"
    assert d == pe_d, f"input_dim mismatch: x has {d}, PE table has {pe_d}"

    out_dtype = jnp.promote_types(x.dtype, pe_table.dtype)   # match torch promotion
    x_itemsize = jnp.dtype(x.dtype).itemsize
    out_itemsize = jnp.dtype(out_dtype).itemsize
    pe_itemsize = out_itemsize

    sd = s * d
    sd_pad = ((sd + 127) // 128) * 128                        # keep stores lane-dense

    pe = pe_table[:s, :].astype(out_dtype).reshape(1, sd)
    x2 = x.reshape(b, sd)
    if sd_pad != sd:
        x2 = jnp.pad(x2, ((0, 0), (0, sd_pad - sd)))
        pe = jnp.pad(pe, ((0, 0), (0, sd_pad - sd)))

    # Block sizing: pure HBM streaming.  Spend VMEM on big blocks (not deeper
    # buffering) with an explicit limit that stays safe on v7x's 64 MiB
    # physical VMEM while giving v5e/v6e near-roofline tiles.
    vmem_budget = 40 << 20
    target_block_bytes = max(
        1 << 20,
        min(8 << 20, vmem_budget * x_itemsize // (2 * (x_itemsize + out_itemsize))),
    )
    tb, tl = _choose_tiles(b, sd_pad, x_itemsize, target_block_bytes)

    grid = (pl.cdiv(b, tb), pl.cdiv(sd_pad, tl))

    x_block_bytes = tb * tl * x_itemsize
    out_block_bytes = tb * tl * out_itemsize
    pe_block_bytes = tl * pe_itemsize
    vmem_limit = 2 * (x_block_bytes + out_block_bytes + pe_block_bytes) + (2 << 20)
    vmem_limit = int(min(vmem_limit, 48 << 20))

    cost = pl.CostEstimate(
        flops=b * sd_pad,
        transcendentals=0,
        bytes_accessed=b * sd_pad * (x_itemsize + out_itemsize) + sd_pad * pe_itemsize,
    )

    io_aliases = {}
    if donate_input and jnp.dtype(out_dtype) == jnp.dtype(x.dtype):
        io_aliases = {0: 0}

    out = pl.pallas_call(
        _pe_add_kernel,
        out_shape=jax.ShapeDtypeStruct((b, sd_pad), out_dtype),
        grid_spec=pltpu.PrefetchScalarGridSpec(
            num_scalar_prefetch=0,
            grid=grid,
            in_specs=[
                pl.BlockSpec((tb, tl), lambda i, j: (i, j)),  # x row/lane tile
                pl.BlockSpec((1, tl), lambda i, j: (0, j)),   # PE row (resident when lanes untiled)
            ],
            out_specs=pl.BlockSpec((tb, tl), lambda i, j: (i, j)),
        ),
        compiler_params=pltpu.CompilerParams(
            dimension_semantics=("parallel", "parallel"),
            vmem_limit_bytes=vmem_limit,
        ),
        cost_estimate=cost,
        input_output_aliases=io_aliases,
    )(x2, pe)

    if sd_pad != sd:
        out = out[:, :sd]
    return out.reshape(b, s, d)


if __name__ == "__main__":
    max_seq_len = 4 * 24
    key = jax.random.PRNGKey(0)

    # Case 1: small shape consistent with the module's forward: [B, S, D].
    batch, seq_len, input_dim = 2, 8, 32
    pe_table = build_position_encoding(input_dim, max_seq_len)
    x = jax.random.normal(key, (batch, seq_len, input_dim), dtype=jnp.float32)

    out = jax.block_until_ready(positional_encoding_forward(x, pe_table))
    ref = x + pe_table[:seq_len, :][None, :, :]
    assert out.shape == (batch, seq_len, input_dim)
    assert out.dtype == jnp.float32
    assert jnp.allclose(out, ref, atol=1e-6), "mismatch vs reference (case 1)"

    # Case 2: full max_seq_len and a larger batch (exercises row tiling + the
    # >=2-step cap on the parallel row axis).
    batch2, seq_len2 = 16, max_seq_len
    x2 = jax.random.normal(jax.random.PRNGKey(1), (batch2, seq_len2, input_dim), dtype=jnp.float32)
    out2 = jax.block_until_ready(positional_encoding_forward(x2, pe_table))
    ref2 = x2 + pe_table[:seq_len2, :][None, :, :]
    assert jnp.allclose(out2, ref2, atol=1e-6), "mismatch vs reference (case 2)"

    # Case 3: bf16 input -> f32 output (matches PyTorch type promotion).
    x3 = jax.random.normal(jax.random.PRNGKey(2), (batch, seq_len, input_dim), dtype=jnp.bfloat16)
    out3 = jax.block_until_ready(positional_encoding_forward(x3, pe_table))
    ref3 = x3.astype(jnp.float32) + pe_table[:seq_len, :][None, :, :]
    assert out3.dtype == jnp.float32
    assert jnp.allclose(out3, ref3, atol=1e-6), "mismatch vs reference (case 3)"

    print("KERNEL_OK")
</pallas_src>

<mosaic_0001>
module attributes {stable_mosaic.version = 11 : i64} {
  func.func @_pe_add_kernel(%arg0: i32, %arg1: i32, %arg2: memref<2x256xf32, #tpu.memory_space<vmem>>, %arg3: memref<1x256xf32, #tpu.memory_space<vmem>>, %arg4: memref<2x256xf32, #tpu.memory_space<vmem>>) attributes {dimension_semantics = [#tpu.dimension_semantics<parallel>, #tpu.dimension_semantics<parallel>], iteration_bounds = array<i64: 1, 1>, scalar_prefetch = 0 : i64, scratch_operands = 0 : i64, tpu.core_type = #tpu.core_type<tc>, window_params = [{transform_indices = @transform_0, window_bounds = array<i64: 2, 256>}, {transform_indices = @transform_1, window_bounds = array<i64: 1, 256>}, {transform_indices = @transform_2, window_bounds = array<i64: 2, 256>}]} {
    %c0 = arith.constant 0 : index
    %c0_0 = arith.constant 0 : index
    %0 = vector.load %arg2[%c0, %c0_0] : memref<2x256xf32, #tpu.memory_space<vmem>>, vector<2x256xf32>
    %c0_1 = arith.constant 0 : index
    %c0_2 = arith.constant 0 : index
    %1 = vector.load %arg3[%c0_1, %c0_2] : memref<1x256xf32, #tpu.memory_space<vmem>>, vector<1x256xf32>
    %2 = vector.broadcast %1 : vector<1x256xf32> to vector<2x256xf32>
    %3 = arith.addf %0, %2 : vector<2x256xf32>
    %c0_3 = arith.constant 0 : index
    %c0_4 = arith.constant 0 : index
    %4 = vector.load %arg4[%c0_3, %c0_4] : memref<2x256xf32, #tpu.memory_space<vmem>>, vector<2x256xf32>
    tpu.vector_store %arg4[%c0_3, %c0_4], %3 {strides = array<i32>} : memref<2x256xf32, #tpu.memory_space<vmem>>, vector<2x256xf32>,
    return
  }
  func.func @transform_0(%arg0: i32, %arg1: i32) -> (i32, i32) {
    %c0_i32 = arith.constant 0 : i32
    return %arg0, %arg1 : i32, i32
  }
  func.func @transform_1(%arg0: i32, %arg1: i32) -> (i32, i32) {
    %c0_i32 = arith.constant 0 : i32
    %c0_i32_0 = arith.constant 0 : i32
    return %c0_i32, %arg1 : i32, i32
  }
  func.func @transform_2(%arg0: i32, %arg1: i32) -> (i32, i32) {
    %c0_i32 = arith.constant 0 : i32
    return %arg0, %arg1 : i32, i32
  }
}

</mosaic_0001>

<bundles_post_ra>
// kernel: tpu_custom_call.1
= control target key start
LH: loop header
LB: loop body
LE: loop exit
PB: predicated region body
PF: predicated region fallthrough
CT: control target
= control target key end

     0   :  { %7 = vsyncpa [#allocation3], 0  ;;  %s172_s0 = inlined_call_operand.hbm [shape: f32[2,256], index: 0, kind: input, shape index: {}]   ;;  %s173_s1 = inlined_call_operand.hbm [shape: f32[1,256], index: 1, kind: input, shape index: {}]   ;;  %s174_s2 = inlined_call_operand.hbm [shape: f32[2,256], index: 2, kind: output, shape index: {}]  }
   0x1   :  { %8 = vsyncpa [#allocation6], 0 }
   0x2   :  { %9 = vsyncpa [#allocation4], 0  ;;  %s144_s9 = smov [#allocation2]   ;;  %s145_s11 = smov [#allocation5]  }
   0x3   :  { %s16_s10 = sshll.u32 %s144_s9, 4  ;;  %s26_s12 = sshll.u32 %s145_s11, 4  ;;  %s17_s10 = int_to_ptr.vmem [resolvable:$true] %s16_s10  ;;  %s27_s12 = int_to_ptr.vmem [resolvable:$true] %s26_s12 }
   0x4   :  { %s86_s13 = scalar_lea.vmem %s17_s10, 64  ;;  %p91_p1 = scmp.lt.s32.totalorder %s17_s10, %s17_s10 }
   0x5   :  { %p87_p0 = scmp.ne.s32.totalorder %s17_s10, %s86_s13  ;;  %p92_p2 = scmp.lt.s32.totalorder %s86_s13, %s86_s13 }
   0x7   :  { %p93_p3 = por %p92_p2, %p91_p1 }
   0x9   :  { %p94_p4 = pnand %p93_p3, %p87_p0 }
   0xb   :  { %97 = shalt.err (!%p94_p4)
}
   0xc   :  { %19 = dma.hbm_to_vmem [thread:$0]  %s172_s0, 64, %s17_s10, [#allocation3]  }
   0xd   :  { %s106_s16 = scalar_lea.vmem %s27_s12, 32  ;;  %p111_p6 = scmp.lt.s32.totalorder %s27_s12, %s27_s12 }
   0xe   :  { %p107_p5 = scmp.ne.s32.totalorder %s27_s12, %s106_s16  ;;  %p112_p7 = scmp.lt.s32.totalorder %s106_s16, %s106_s16 }
  0x10   :  { %p113_p8 = por %p112_p7, %p111_p6 }
  0x12   :  { %p114_p9 = pnand %p113_p8, %p107_p5 }
  0x14   :  { %117 = shalt.err (!%p114_p9)
}
  0x15   :  { %29 = dma.hbm_to_vmem [thread:$0]  %s173_s1, 32, %s27_s12, [#allocation6]  }
  0x16   :  { %138 = dma.done.wait [#allocation3], 64  }
  0x17   :  { %139 = vsyncadd [#allocation3], 4294967232 }
  0x18   :  { %140 = dma.done.wait [#allocation6], 32  }
  0x19   :  { %141 = vsyncadd [#allocation6], 4294967264  ;;  %v39_v0 = vlaneseq  ;;  %v146_v1 = vmov 1983009808   ;;  %v37_v7 = vld [vmem:[#allocation5] sm:$0x3] }
  0x1a   :  { %v49_v2 = vunpack.c.l.s4 %v146_v1  ;;  %v36_v12 = vld [vmem:[#allocation2] sm:$0xf]  ;;  %s147_s0 = smov [#allocation7]  }
  0x1b   :  { %v40_v3 = vshrl.u32 %v39_v0, 7  ;;  %s64_s19 = sshll.u32 %s147_s0, 4  ;;  %s65_s19 = int_to_ptr.vmem [resolvable:$true] %s64_s19 }
  0x1c   :  { %v50_v6 = vunpack.c.0.s8 %v49_v2  ;;  %s118_s1 = scalar_lea.vmem %s65_s19, 64  ;;  %p123_p11 = scmp.lt.s32.totalorder %s65_s19, %s65_s19 }
  0x1d   :  { %v41_v4 = vsub.s32 0, %v40_v3  ;;  %v45_v5 = vsub.s32 1, %v40_v3  ;;  %p119_p10 = scmp.ne.s32.totalorder %s65_s19, %s118_s1  ;;  %p124_p12 = scmp.lt.s32.totalorder %s118_s1, %s118_s1 }
  0x1e   :  { %v53_v10 = vsub.s32 %v50_v6, %v40_v3 }
  0x1f   :  { %v42_v8 = vrot.slane %v37_v7, %v41_v4  ;;  %v46_v9 = vrot.slane %v37_v7, %v45_v5  ;;  %p125_p13 = por %p124_p12, %p123_p11 }
  0x21   :  { %v47_v11 = vcombine.low %v42_v8, %v46_v9  ;;  %p126_p0 = pnand %p125_p13, %p119_p10 }
  0x23   :  { %v54_v13 = vrot.slane %v47_v11, %v53_v10 }
  0x25   :  { %v56_v14 = vadd.f32 %v54_v13, %v36_v12 }
  0x27   :  { %57 = vst [vmem:[#allocation7] sm:$0xf] %v56_v14 }
  0x28   :  { %129 = shalt.err (!%p126_p0)
}
  0x29   :  { %67 = dma.vmem_to_hbm [thread:$0]  %s65_s19, 64, %s174_s2, [#allocation4]  }
  0x2a   :  { %142 = dma.done.wait [#allocation4], 64  }
  0x2b   :  { %143 = vsyncadd [#allocation4], 4294967232 }
  0x2c   :  { %71 = vsyncpa [#allocation3], 1 }
  0x2d   :  { %72 = vsyncpa [#allocation6], 1 }
  0x2e   :  { %73 = vsyncpa [#allocation4], 1 }

</bundles_post_ra>
